<compile_context>
chip_gen: v5e
topology: v5e:2x2
jax: 0.10.0
libtpu: 0.0.40
codegen_flags: <defaults>
</compile_context>

<pallas_src>
import functools

import jax
import jax.numpy as jnp
from jax.experimental import pallas as pl
from jax.experimental.pallas import tpu as pltpu


def _biasfree_ln_nchw_kernel(x_ref, w_ref, o_ref, *, inv_c, bf16_store):
    # x_ref: (1, C, T) block; w_ref: (1, C, 1) weight (already in compute dtype).
    # Reductions in f32; the f32 upcast is only live for the statistics.
    xf = x_ref[...].astype(jnp.float32)                      # (1, C, T)
    s1 = jnp.sum(xf, axis=1, keepdims=True)                  # (1, 1, T)
    s2 = jnp.sum(xf * xf, axis=1, keepdims=True)             # (1, 1, T)
    mu = s1 * inv_c
    var = jnp.maximum(s2 * inv_c - mu * mu, 0.0)             # biased (unbiased=False)
    inv = jax.lax.rsqrt(var + 1e-5)                          # EUP slot, exact-enough rsqrt

    w = w_ref[...]                                           # pre-cast in wrapper
    if bf16_store:
        # v7x bf16 fast path: packed bf16 multiplies on the store path (reductions stay f32).
        o_ref[...] = (x_ref[...] * inv.astype(jnp.bfloat16) * w).astype(o_ref.dtype)
    else:
        # Re-read x_ref so the big f32 temp above is not kept live across the store.
        o_ref[...] = (x_ref[...].astype(jnp.float32) * inv * w).astype(o_ref.dtype)


def _tpu_generation():
    """Best-effort TPU generation detection; conservative fallback on failure."""
    try:
        kind = jax.devices()[0].device_kind.lower()
    except Exception:
        return 0
    if "v7" in kind or "tpu7" in kind:
        return 7
    if "v6" in kind:
        return 6
    if "v5" in kind:
        return 5
    return 0


def _generation_config(gen):
    if gen >= 7:
        # v7x: 3.2 TB/s HBM but only 64 MiB VMEM -> mid-size blocks, explicit cap,
        # megacore-balanced grid, packed-bf16 store path.
        return dict(target_block_bytes=4 << 20, vmem_limit_bytes=48 << 20,
                    even_grid=True, bf16_fast_store=True)
    if gen == 6:
        # v6e: 128 MiB physical VMEM; default scoped limit (32 MiB) must be raised
        # for 8 MiB blocks (2x in + 2x out buffers + f32 temps).
        return dict(target_block_bytes=8 << 20, vmem_limit_bytes=96 << 20,
                    even_grid=False, bf16_fast_store=False)
    # v5e / unknown: 2 MiB blocks already sit at >93% of roofline; default scoped VMEM ok.
    return dict(target_block_bytes=2 << 20, vmem_limit_bytes=None,
                even_grid=False, bf16_fast_store=False)


def _choose_tile_hw(hw, c, itemsize, target_block_bytes, batch, even_grid):
    """Lane-dense spatial tile: multiple of 128 (or the full extent if hw <= 128)."""
    if hw <= 128:
        return int(hw)                                       # full extent -> always legal
    padded_hw = pl.cdiv(hw, 128) * 128
    # Budget the in-kernel f32 temporaries: count sub-f32 input blocks as 4-byte elements.
    eff_itemsize = max(itemsize, 4)
    t = max(128, (target_block_bytes // max(1, c * eff_itemsize)) // 128 * 128)
    t = min(t, padded_hw)
    # Even out tile sizes so the tail block is not mostly padding.
    n_tiles = pl.cdiv(padded_hw, t)
    t = min(padded_hw, pl.cdiv(pl.cdiv(padded_hw, n_tiles), 128) * 128)
    if even_grid:
        # v7x megacore: keep the total grid step count even and >= 8 when possible.
        def _steps(tile):
            return batch * pl.cdiv(hw, tile)
        while t > 128 and (_steps(t) < 8 or _steps(t) % 2 != 0):
            t -= 128
    return int(t)


def biasfree_layernorm_nchw(x, weight, *, target_block_bytes=None, vmem_limit_bytes=None):
    """BiasFree LayerNorm over channels of an NCHW tensor (KADANet usage).

    x: (B, C, H, W) any float dtype; weight: (C,). Returns same shape/dtype as x.
    No transposes: reshapes NCHW -> (B, C, H*W) are free layout views.
    """
    B, C, H, W = x.shape
    HW = H * W

    gen = _tpu_generation()
    cfg = _generation_config(gen)
    if target_block_bytes is None:
        target_block_bytes = cfg["target_block_bytes"]
    if vmem_limit_bytes is None:
        vmem_limit_bytes = cfg["vmem_limit_bytes"]

    bf16_store = bool(cfg["bf16_fast_store"]) and x.dtype == jnp.bfloat16
    w_dtype = jnp.bfloat16 if bf16_store else jnp.float32

    x3 = x.reshape(B, C, HW)
    w3 = weight.reshape(1, C, 1).astype(w_dtype)             # pre-cast once, VMEM-resident

    itemsize = jnp.dtype(x.dtype).itemsize
    tile_hw = _choose_tile_hw(HW, C, itemsize, target_block_bytes, B, cfg["even_grid"])
    grid = (B, pl.cdiv(HW, tile_hw))

    kernel = functools.partial(_biasfree_ln_nchw_kernel,
                               inv_c=1.0 / C, bf16_store=bf16_store)

    cost = pl.CostEstimate(
        flops=5 * B * C * HW,
        transcendentals=B * HW,
        bytes_accessed=2 * B * C * HW * itemsize + C * jnp.dtype(w_dtype).itemsize,
    )

    y3 = pl.pallas_call(
        kernel,
        out_shape=jax.ShapeDtypeStruct((B, C, HW), x.dtype),
        grid_spec=pltpu.PrefetchScalarGridSpec(
            num_scalar_prefetch=0,
            grid=grid,
            in_specs=[
                # (1, C, tile_hw): C is full extent (legal for any C), spatial lane-dense.
                pl.BlockSpec((1, C, tile_hw), lambda b, j: (b, 0, j)),
                # weight stays VMEM-resident (constant index map), full-extent block.
                pl.BlockSpec((1, C, 1), lambda b, j: (0, 0, 0)),
            ],
            out_specs=pl.BlockSpec((1, C, tile_hw), lambda b, j: (b, 0, j)),
        ),
        compiler_params=pltpu.CompilerParams(
            dimension_semantics=("parallel", "parallel"),
            vmem_limit_bytes=vmem_limit_bytes,
        ),
        cost_estimate=cost,
    )(x3, w3)
    return y3.reshape(B, C, H, W)


def _reference_nchw(x, w):
    xf = x.astype(jnp.float32)
    var = jnp.var(xf, axis=1, keepdims=True)                 # biased variance over C
    out = xf / jnp.sqrt(var + 1e-5) * w.reshape(1, -1, 1, 1)
    return out.astype(x.dtype)


if __name__ == "__main__":
    key = jax.random.PRNGKey(0)
    k1, k2 = jax.random.split(key)

    # Case 1: small demo shape, default ones weight (module __init__), f32 I/O.
    B, C, H, W = 2, 4, 16, 16
    x = jax.random.normal(k1, (B, C, H, W), dtype=jnp.float32)
    weight = jnp.ones((C,), dtype=jnp.float32)
    out = jax.block_until_ready(biasfree_layernorm_nchw(x, weight))
    ref = _reference_nchw(x, weight)
    assert out.shape == x.shape and out.dtype == x.dtype
    assert jnp.allclose(out, ref, atol=1e-4, rtol=1e-4)

    # Case 2: spatial size not a multiple of 128 (exercises the cdiv/masked-tail path)
    # and a non-trivial weight.
    B2, C2, H2, W2 = 1, 8, 13, 13
    x2 = jax.random.normal(k2, (B2, C2, H2, W2), dtype=jnp.float32)
    w2 = jnp.linspace(0.5, 1.5, C2, dtype=jnp.float32)
    out2 = jax.block_until_ready(biasfree_layernorm_nchw(x2, w2))
    ref2 = _reference_nchw(x2, w2)
    assert jnp.allclose(out2, ref2, atol=1e-4, rtol=1e-4)

    # Case 3: bf16 I/O (HBM traffic halved), f32 accumulation inside the kernel.
    # On v7x this also exercises the packed-bf16 store path.
    xb = x.astype(jnp.bfloat16)
    outb = jax.block_until_ready(biasfree_layernorm_nchw(xb, weight))
    refb = _reference_nchw(xb, weight)
    assert outb.dtype == jnp.bfloat16
    assert jnp.allclose(outb.astype(jnp.float32), refb.astype(jnp.float32),
                        atol=5e-2, rtol=5e-2)

    print("KERNEL_OK")
</pallas_src>

<mosaic_0001>
module attributes {stable_mosaic.version = 11 : i64} {
  func.func @_biasfree_ln_nchw_kernel(%arg0: i32, %arg1: i32, %arg2: memref<1x4x256xf32, #tpu.memory_space<vmem>>, %arg3: memref<1x4x1xf32, #tpu.memory_space<vmem>>, %arg4: memref<1x4x256xf32, #tpu.memory_space<vmem>>) attributes {dimension_semantics = [#tpu.dimension_semantics<parallel>, #tpu.dimension_semantics<parallel>], iteration_bounds = array<i64: 2, 1>, scalar_prefetch = 0 : i64, scratch_operands = 0 : i64, tpu.core_type = #tpu.core_type<tc>, window_params = [{transform_indices = @transform_0, window_bounds = array<i64: 1, 4, 256>}, {pipeline_mode = #tpu.pipeline_mode<synchronous>, transform_indices = @transform_1, window_bounds = array<i64: 1, 4, 1>}, {transform_indices = @transform_2, window_bounds = array<i64: 1, 4, 256>}]} {
    %c0 = arith.constant 0 : index
    %c0_0 = arith.constant 0 : index
    %c0_1 = arith.constant 0 : index
    %0 = vector.load %arg2[%c0, %c0_0, %c0_1] : memref<1x4x256xf32, #tpu.memory_space<vmem>>, vector<1x4x256xf32>
    %cst = arith.constant dense<0.000000e+00> : vector<1x256xf32>
    %1 = vector.multi_reduction <add>, %0, %cst [1] : vector<1x4x256xf32> to vector<1x256xf32>
    %2 = vector.shape_cast %1 : vector<1x256xf32> to vector<1x1x256xf32>
    %3 = arith.mulf %0, %0 : vector<1x4x256xf32>
    %cst_2 = arith.constant dense<0.000000e+00> : vector<1x256xf32>
    %4 = vector.multi_reduction <add>, %3, %cst_2 [1] : vector<1x4x256xf32> to vector<1x256xf32>
    %5 = vector.shape_cast %4 : vector<1x256xf32> to vector<1x1x256xf32>
    %cst_3 = arith.constant 2.500000e-01 : f32
    %6 = vector.broadcast %cst_3 : f32 to vector<1x1x256xf32>
    %7 = arith.mulf %2, %6 : vector<1x1x256xf32>
    %cst_4 = arith.constant 2.500000e-01 : f32
    %8 = vector.broadcast %cst_4 : f32 to vector<1x1x256xf32>
    %9 = arith.mulf %5, %8 : vector<1x1x256xf32>
    %10 = arith.mulf %7, %7 : vector<1x1x256xf32>
    %11 = arith.subf %9, %10 : vector<1x1x256xf32>
    %cst_5 = arith.constant 0.000000e+00 : f32
    %12 = vector.broadcast %cst_5 : f32 to vector<1x1x256xf32>
    %13 = arith.maximumf %11, %12 : vector<1x1x256xf32>
    %cst_6 = arith.constant 9.99999974E-6 : f32
    %14 = vector.broadcast %cst_6 : f32 to vector<1x1x256xf32>
    %15 = arith.addf %13, %14 : vector<1x1x256xf32>
    %16 = math.rsqrt %15 : vector<1x1x256xf32>
    %c0_7 = arith.constant 0 : index
    %c0_8 = arith.constant 0 : index
    %c0_9 = arith.constant 0 : index
    %17 = vector.load %arg3[%c0_7, %c0_8, %c0_9] : memref<1x4x1xf32, #tpu.memory_space<vmem>>, vector<1x4x1xf32>
    %c0_10 = arith.constant 0 : index
    %c0_11 = arith.constant 0 : index
    %c0_12 = arith.constant 0 : index
    %18 = vector.load %arg2[%c0_10, %c0_11, %c0_12] : memref<1x4x256xf32, #tpu.memory_space<vmem>>, vector<1x4x256xf32>
    %19 = vector.broadcast %16 : vector<1x1x256xf32> to vector<1x4x256xf32>
    %20 = arith.mulf %18, %19 : vector<1x4x256xf32>
    %21 = vector.broadcast %17 : vector<1x4x1xf32> to vector<1x4x256xf32>
    %22 = arith.mulf %20, %21 : vector<1x4x256xf32>
    %c0_13 = arith.constant 0 : index
    %c0_14 = arith.constant 0 : index
    %c0_15 = arith.constant 0 : index
    %23 = vector.load %arg4[%c0_13, %c0_14, %c0_15] : memref<1x4x256xf32, #tpu.memory_space<vmem>>, vector<1x4x256xf32>
    tpu.vector_store %arg4[%c0_13, %c0_14, %c0_15], %22 {strides = array<i32>} : memref<1x4x256xf32, #tpu.memory_space<vmem>>, vector<1x4x256xf32>,
    return
  }
  func.func @transform_0(%arg0: i32, %arg1: i32) -> (i32, i32, i32) {
    %c0_i32 = arith.constant 0 : i32
    %c0_i32_0 = arith.constant 0 : i32
    return %arg0, %c0_i32, %arg1 : i32, i32, i32
  }
  func.func @transform_1(%arg0: i32, %arg1: i32) -> (i32, i32, i32) {
    %c0_i32 = arith.constant 0 : i32
    %c0_i32_0 = arith.constant 0 : i32
    %c0_i32_1 = arith.constant 0 : i32
    %c0_i32_2 = arith.constant 0 : i32
    return %c0_i32, %c0_i32_0, %c0_i32_1 : i32, i32, i32
  }
  func.func @transform_2(%arg0: i32, %arg1: i32) -> (i32, i32, i32) {
    %c0_i32 = arith.constant 0 : i32
    %c0_i32_0 = arith.constant 0 : i32
    return %arg0, %c0_i32, %arg1 : i32, i32, i32
  }
}

</mosaic_0001>

<bundles_post_ra>
// kernel: tpu_custom_call.1
= control target key start
LH: loop header
LB: loop body
LE: loop exit
PB: predicated region body
PF: predicated region fallthrough
CT: control target
= control target key end

     0   :  { %7 = vsyncpa [#allocation3], 0  ;;  %s733_s0 = inlined_call_operand.hbm [shape: f32[2,4,256], index: 0, kind: input, shape index: {}]   ;;  %s734_s1 = inlined_call_operand.vmem [shape: f32[1,4,1], index: 1, kind: input, shape index: {}]   ;;  %s735_s2 = inlined_call_operand.hbm [shape: f32[2,4,256], index: 2, kind: output, shape index: {}]  }
   0x1   :  { %9 = vsyncpa [#allocation3 + $0x1], 0 }
   0x2   :  { %10 = vsyncpa [#allocation4], 0 }
   0x3   :  { %12 = vsyncpa [#allocation4 + $0x1], 0  ;;  %s595_s9 = smov 0   ;;  %s597_s10 = smov 0  }
   0x4   :  { %s599_s11 = smov 0   ;;  %s601_s12 = smov 0  }
   0x5   :  { %s603_s13 = smov 0   ;;  %s605_s14 = smov 0  }
   0x6 LB: > { %s378_s15 = sadd.s32 4294967295, %s576_s14   ;;  %s379_s16 = sadd.s32 4294967294, %s576_s14   ;;  %s576_s14 = sphi %s605_s14, %s18_s14   ;;  %s572_s13 = sphi %s603_s13, %s744_s13   ;;  %s568_s12 = sphi %s601_s12, %s743_s12   ;;  %s564_s11 = sphi %s599_s11, %s742_s11   ;;  %s560_s10 = sphi %s597_s10, %s741_s10   ;;  %s556_s9 = sphi %s595_s9, %s740_s9  }
   0x7   : > { %s30_s17 = sadd.s32 1, %s572_s13  ;;  %s39_s18 = sadd.s32 1, %s564_s11 }
   0x8   : > { %p32_p0 = scmp.ge.s32.totalorder %s30_s17, 2  ;;  %p46_p1 = scmp.ne.s32.totalorder %s564_s11, %s560_s10 }
   0x9   : > { %p47_p2 = scmp.eq.s32.totalorder %s576_s14, 0  ;;  %p52_p3 = scmp.ne.s32.totalorder %s560_s10, %s556_s9 }
   0xa   : > { %s746_s17 = smov (%p32_p0, %s30_s17), 0  ;;  %p53_p5 = scmp.eq.s32.totalorder %s378_s15, 0 }
   0xb   : > { %p636_p4 = por %p47_p2, %p46_p1  ;;  %s34_s20 = ssub.s32 %s572_s13, %s746_s17 }
   0xc   : > { %p99_p6 = scmp.eq.s32.totalorder %s378_s15, 1  ;;  %p37_p7 = scmp.eq.s32.totalorder %s34_s20, 0 }
   0xd   : > { %p642_p8 = por %p53_p5, %p52_p3  ;;  %p105_p10 = scmp.eq.s32.totalorder %s379_s16, 1 }
   0xe   : > { %p646_p9 = por %p99_p6, %p46_p1  ;;  %p381_p12 = scmp.ge.s32.totalorder %s576_s14, 2 }
   0xf   : > { %s651_s23 = scalar_select %p37_p7, %s564_s11, %s39_s18  }
  0x10   : > { %p653_p11 = por %p105_p10, %p52_p3  ;;  %p407_p13 = scmp.lt.s32.totalorder %s576_s14, 2 }
  0x11   : > { %s128_s25 = sand.u32 1, %s564_s11   ;;  %s393_s27 = sshll.u32 %s572_s13, 3 }
  0x12   : > { %s382_s26 = sshll.u32 %s128_s25, 3  ;;  %s139_s30 = scalar_lea.hbm %s733_s0, %s393_s27 }
  0x13   : > { %s132_s3 = scalar_lea.vmem [#allocation2], %s382_s26  ;;  %s141_s5 = sshll.u32 %s139_s30, 4  ;;  %s142_s5 = int_to_ptr.hbm [resolvable:$true] %s141_s5 }
  0x14   : > { %s143_s4 = sshll.u32 %s132_s3, 4  ;;  %p400_p0 = pnand %p407_p13, %p636_p4  ;;  %s144_s4 = int_to_ptr.vmem [resolvable:$true] %s143_s4 }
  0x15   : > { %p385_p1 = scmp.ge.s32.totalorder %s576_s14, 1  ;;  %p148_p2 = scmp.lt.s32.totalorder %s576_s14, 3 }
  0x16   : > { %s129_s6 = scalar_lea.sflag [#allocation3], %s128_s25 }
  0x17   : > { %402 = dma.hbm_to_vmem [thread:$0]  (!%p400_p0), %s142_s5, 128, %s144_s4, %s129_s6  }
  0x18   : > { %p149_p3 = pnand %p385_p1, %p148_p2 }
  0x19   : > { %s669_s7 = sand.u32 (!%p149_p3), 1, %s560_s10  }
  0x1a   : > { %152 = sbr.rel (%p149_p3) target bundleno = 156 (0x9c), region = 28  ;;  %s386_s8 = sshll.u32 (!%p149_p3), %s669_s7, 3 }
  0x1b   : > { %s155_s15 = scalar_lea.sflag (!%p149_p3), [#allocation3], %s669_s7  ;;  %s158_s16 = scalar_lea.vmem (!%p149_p3), [#allocation2], %s386_s8 }
  0x1f   : > { %547 = dma.done.wait (%p642_p8), %s155_s15, 128  }
  0x20   : > { %549 = vsyncadd (%p642_p8), %s155_s15, 4294967168  ;;  %v578_v0 = vmov 0   ;;  %v257_v1 = vld [vmem:[%s734_s1] sm:$0xf]  ;;  %v682_v2 = vld [vmem:[%s158_s16] sm:$0xff]  ;;  %vm189_vm0 = vcmask 1043456  }
  0x21   : > { %459 = vset.pattern.permute.xlu0 %v578_v0  ;;  %184 = vst [vmem:[#allocation1] ss:$2 sm:$0xff] %v682_v2  ;;  %v204_v3 = vmul.f32 %v682_v2, %v682_v2  ;;  %v579_v62 = vmov 839922192   ;;  %s394_s20 = sshll.u32 %s568_s12, 3  ;;  %s179_s27 = scalar_lea.vmem [#allocation5], %s386_s8 }
  0x22   : > { %266 = vperm.xlu0 %459, %v257_v1   ;;  %v269_v63 = vunpack.c.l.s4 %v579_v62  ;;  %s289_s26 = scalar_lea.hbm %s735_s2, %s394_s20  ;;  %s291_s28 = sshll.u32 %s179_s27, 4  ;;  %s292_s28 = int_to_ptr.vmem [resolvable:$true] %s291_s28 }
  0x23   : > { %s293_s29 = sshll.u32 %s289_s26, 4  ;;  %s276_s12 = scalar_lea.sflag [#allocation4], %s669_s7  ;;  %s294_s29 = int_to_ptr.hbm [resolvable:$true] %s293_s29 }
  0x24   : > { %s508_s30 = sshra.s32 %s294_s29, 4  ;;  %s514_s6 = scalar_lea.hbm %s735_s2, 16  ;;  %s509_s30 = int_to_ptr.hbm [resolvable:$true] %s508_s30 }
  0x25   : > { %s510_s3 = scalar_lea.hbm %s509_s30, 8  ;;  %p515_p7 = scmp.lt.s32.totalorder %s509_s30, %s735_s2 }
  0x26   : > { %p511_p4 = scmp.ne.s32.totalorder %s509_s30, %s510_s3  ;;  %p516_p8 = scmp.lt.s32.totalorder %s514_s6, %s510_s3 }
  0x28   : > { %v185_v4 = vld.sshfl [vmem:[#allocation1] sm:$0xff pattern:$0x75316420]  ;;  %v186_v5 = vld.sshfl [vmem:[#allocation1 + $0x8] sm:$0xff pattern:$0x75316420]  ;;  %p512_p5 = pnand %p511_p4, %p646_p9  ;;  %p517_p10 = por %p516_p8, %p515_p7 }
  0x29   : > { %206 = vst [vmem:[#allocation1] ss:$2 sm:$0xff] %v204_v3  ;;  %v197_v6 = vsel %vm189_vm0, %v186_v5, 0.0  ;;  %v190_v9 = vsel %vm189_vm0, %v185_v4, 0.0  ;;  %v270_v3 = vunpack.c.0.s8 %v269_v63 }
  0x2a   : > { %v198_v7 = vrot.slane %v197_v6, 4  ;;  %v191_v11 = vrot.slane %v190_v9, 4  ;;  %p513_p6 = pneg %p512_p5 }
  0x2c   : > { %v199_v12 = vadd.f32 %v198_v7, %v197_v6  ;;  %v192_v16 = vadd.f32 %v191_v11, %v190_v9  ;;  %p518_p13 = pnand %p517_p10, %p513_p6 }
  0x2e   : > { %v200_v17 = vrot.slane %v199_v12, 2  ;;  %v193_v20 = vrot.slane %v192_v16, 2 }
  0x30   : > { %v208_v8 = vld.sshfl [vmem:[#allocation1 + $0x8] sm:$0xff pattern:$0x75316420]  ;;  %v207_v13 = vld.sshfl [vmem:[#allocation1] sm:$0xff pattern:$0x75316420]  ;;  %v201_v21 = vadd.f32 %v200_v17, %v199_v12  ;;  %v194_v24 = vadd.f32 %v193_v20, %v192_v16 }
  0x31   : > { %v218_v10 = vsel %vm189_vm0, %v208_v8, 0.0  ;;  %v211_v15 = vsel %vm189_vm0, %v207_v13, 0.0 }
  0x32   : > { %v219_v14 = vrot.slane %v218_v10, 4  ;;  %v212_v18 = vrot.slane %v211_v15, 4  ;;  %v202_v25 = vrot.slane %v201_v21, 1  ;;  %v195_v28 = vrot.slane %v194_v24, 1 }
  0x34   : > { %v220_v19 = vadd.f32 %v219_v14, %v218_v10  ;;  %v213_v22 = vadd.f32 %v212_v18, %v211_v15  ;;  %v203_v29 = vadd.f32 %v202_v25, %v201_v21  ;;  %v196_v32 = vadd.f32 %v195_v28, %v194_v24 }
  0x36   : > { %v221_v23 = vrot.slane %v220_v19, 2  ;;  %v214_v26 = vrot.slane %v213_v22, 2  ;;  %v226_v35 = vmul.f32 0.25, %v203_v29  ;;  %v225_v37 = vmul.f32 0.25, %v196_v32 }
  0x38   : > { %v222_v27 = vadd.f32 %v221_v23, %v220_v19  ;;  %v215_v30 = vadd.f32 %v214_v26, %v213_v22  ;;  %v230_v39 = vmul.f32 %v226_v35, %v226_v35  ;;  %v229_v41 = vmul.f32 %v225_v37, %v225_v37 }
  0x3a   : > { %v223_v31 = vrot.slane %v222_v27, 1  ;;  %v216_v33 = vrot.slane %v215_v30, 1 }
  0x3c   : > { %v224_v34 = vadd.f32 %v223_v31, %v222_v27  ;;  %v217_v36 = vadd.f32 %v216_v33, %v215_v30 }
  0x3e   : > { %v228_v38 = vmul.f32 0.25, %v224_v34  ;;  %v227_v40 = vmul.f32 0.25, %v217_v36 }
  0x40   : > { %v232_v42 = vsub.f32 %v228_v38, %v230_v39  ;;  %v231_v43 = vsub.f32 %v227_v40, %v229_v41 }
  0x42   : > { %v234_v44 = vmax.f32 %v232_v42, 0.0  ;;  %v233_v45 = vmax.f32 %v231_v43, 0.0 }
  0x44   : > { %v236_v46 = vadd.f32 1e-05, %v234_v44  ;;  %v235_v47 = vadd.f32 1e-05, %v233_v45 }
  0x46   : > { %460 = vrsqrt.f32 %v236_v46  ;;  %vm253_vm1 = vweird.f32 %v236_v46  ;;  %vm243_vm4 = vweird.f32 %v235_v47 }
  0x47   : > { %462 = vrsqrt.f32 %v235_v47 }
  0x4c   : > { %v461_v48 = vpop.eup %460 }
  0x4d   : > { %v248_v49 = vmul.f32 %v461_v48, %v236_v46  ;;  %v463_v50 = vpop.eup %462  ;;  %vm254_vm2 = vweird.f32 %v461_v48 }
  0x4e   : > { %v238_v51 = vmul.f32 %v463_v50, %v235_v47  ;;  %vm255_vm3 = vmor %vm253_vm1, %vm254_vm2  ;;  %vm244_vm5 = vweird.f32 %v463_v50 }
  0x4f   : > { %v249_v52 = vmul.f32 %v461_v48, %v248_v49  ;;  %vm245_vm6 = vmor %vm243_vm4, %vm244_vm5 }
  0x50   : > { %v239_v53 = vmul.f32 %v463_v50, %v238_v51 }
  0x51   : > { %v250_v54 = vmul.f32 0.5, %v249_v52 }
  0x52   : > { %v240_v55 = vmul.f32 0.5, %v239_v53 }
  0x53   : > { %v251_v56 = vsub.f32 1.5, %v250_v54 }
  0x54   : > { %v241_v57 = vsub.f32 1.5, %v240_v55 }
  0x55   : > { %v252_v58 = vmul.f32 %v461_v48, %v251_v56 }
  0x56   : > { %v242_v59 = vmul.f32 %v463_v50, %v241_v57 }
  0x57   : > { %v256_v60 = vsel %vm255_vm3, %v461_v48, %v252_v58 }
  0x58   : > { %v260_v61 = vrot.slane %v256_v60, 4  ;;  %v246_v0 = vsel %vm245_vm6, %v463_v50, %v242_v59 }
  0x5a   : > { %v261_v1 = vsel %vm189_vm0, %v246_v0, %v260_v61 }
  0x5b   : > { %v263_v4 = vmul.f32 %v261_v1, %v682_v2 }
  0x94   : > { %v267_v5 = vpop.permute.xlu0 %266 }
  0x95   : > { %v271_v6 = vperm.slane %v267_v5, %v270_v3 }
  0x97   : > { %v273_v7 = vmul.f32 %v271_v6, %v263_v4 }
  0x99   : > { %274 = vst [vmem:[%s179_s27] sm:$0xff] %v273_v7 }
  0x9a   : > { %521 = shalt.err (!%p518_p13)
}
  0x9b   : > { %397 = dma.vmem_to_hbm [thread:$0]  (%p646_p9), %s292_s28, 128, %s294_s29, %s276_s12  }
  0x9c PF: > { %s305_s7 = sand.u32 1, %s556_s9   ;;  %p404_p0 = pnand %p381_p12, %p653_p11 }
  0x9d   : > { %s306_s16 = scalar_lea.sflag [#allocation4], %s305_s7 }
  0x9e   : > { %p405_p1 = pneg %p404_p0 }
  0xa0   : > { %551 = dma.done.wait (%p405_p1), %s306_s16, 128  }
  0xa1   : > { %553 = vsyncadd (%p405_p1), %s306_s16, 4294967168  ;;  %s18_s14 = sadd.s32 1, %s576_s14   ;;  %s740_s9 = smov %s560_s10 }
  0xa2   : > { %p15_p2 = scmp.ge.s32.totalorder %s18_s14, 4   ;;  %s741_s10 = smov %s564_s11 }
  0xa3   : > { %s742_s11 = smov %s651_s23  ;;  %s743_s12 = smov %s572_s13 }
  0xa4   : > { %s744_s13 = smov %s746_s17  ;;  %17 = sbr.rel (!%p15_p2) target bundleno = 6 (0x6), region = 73 }
  0xa9   :  { %312 = vsyncpa [#allocation3], 1 }
  0xaa   :  { %314 = vsyncpa [#allocation3 + $0x1], 1 }
  0xab   :  { %315 = vsyncpa [#allocation4], 1 }
  0xac   :  { %317 = vsyncpa [#allocation4 + $0x1], 1 }

</bundles_post_ra>
